<compile_context>
chip_gen: v5e
topology: v5e:2x2
jax: 0.10.0
libtpu: 0.0.40
codegen_flags: <defaults>
</compile_context>

<pallas_src>
import jax
import jax.numpy as jnp
from jax.experimental import pallas as pl
from jax.experimental.pallas import tpu as pltpu

_MIB = 1024 * 1024


# ---------------------------------------------------------------------------
# Materializing path, variant 1 (default): HBM -> HBM chunked DMA copy.
# ---------------------------------------------------------------------------
def _hbm_dma_copy(x, *, max_chunks=4):
    """Copy `x` directly HBM->HBM with chunked async DMAs (no VMEM staging)."""
    num_rows = x.shape[0]
    n_chunks = max(1, min(max_chunks, num_rows))
    rows_per_chunk = -(-num_rows // n_chunks)          # ceil div (static)
    n_chunks = -(-num_rows // rows_per_chunk)          # actual chunk count

    def kernel(x_hbm, o_hbm, sems):
        # Issue all chunk DMAs first (they run concurrently on the DMA
        # engines), then wait on all of them.
        copies = []
        for c in range(n_chunks):                      # static, unrolled
            start = c * rows_per_chunk
            size = min(rows_per_chunk, num_rows - start)
            cp = pltpu.make_async_copy(
                x_hbm.at[pl.ds(start, size)],
                o_hbm.at[pl.ds(start, size)],
                sems.at[c],
            )
            cp.start()
            copies.append(cp)
        for cp in copies:
            cp.wait()

    return pl.pallas_call(
        kernel,
        out_shape=jax.ShapeDtypeStruct(x.shape, x.dtype),
        in_specs=[pl.BlockSpec(memory_space=pl.ANY)],   # raw HBM ref, no auto-DMA
        out_specs=pl.BlockSpec(memory_space=pl.ANY),
        scratch_shapes=[pltpu.SemaphoreType.DMA((n_chunks,))],
    )(x)


# ---------------------------------------------------------------------------
# Materializing path, variant 2: tiled VMEM copy (review fixes applied).
# ---------------------------------------------------------------------------
def _copy_tile_kernel(x_ref, o_ref):
    # Pure identity on the current row tile.
    o_ref[...] = x_ref[...]


def _vmem_budget_and_limit():
    """Pick a per-chip VMEM budget for live tile buffers + a scoped limit."""
    phys = 64 * _MIB  # conservative fallback (v7x physical VMEM)
    try:
        info = pltpu.get_tpu_info()
        phys = int(getattr(info, "vmem_capacity_bytes", phys))
    except Exception:
        pass
    # 4 live tile buffers (double-buffered input + double-buffered output).
    budget = min(24 * _MIB, phys // 4)
    # Raise the scoped VMEM limit explicitly (stays well under physical).
    limit = max(min(phys - 8 * _MIB, 2 * budget), budget + 4 * _MIB)
    return budget, limit


def _lane_dense_2d(x):
    """Reshape a 2-D array so its last dim is a large multiple of 128.

    Lane-dense output is the biggest measured single lever (unmasked vst vs
    masked vst.msk).  Falls back to the original shape if impossible.
    """
    rows, lanes = x.shape
    total = rows * lanes
    best = lanes if lanes % 128 == 0 else 0
    for lane in (1024, 512, 256, 128):
        if total % lane == 0:
            best = max(best, lane)
            break
    if best == 0 or best == lanes:
        return x, False          # keep original layout (still correct)
    return x.reshape(total // best, best), True


def _vmem_tiled_copy(x):
    """Materialize `x` through a row-tiled Pallas copy (fresh output buffer)."""
    orig_shape = x.shape
    x2d, reshaped = _lane_dense_2d(x)
    rows, lanes = x2d.shape
    itemsize = x2d.dtype.itemsize

    # dtype-aware sublane alignment: 8 for f32, 16 for bf16/f16, 32 for int8/fp8.
    sub = max(8, 32 // itemsize)

    budget, vmem_limit = _vmem_budget_and_limit()
    bytes_per_row = lanes * itemsize
    # VMEM is the binding constraint (no arbitrary row cap): 4 live tiles.
    max_rows = max(sub, (budget // (4 * bytes_per_row)) // sub * sub)
    tm = min(rows, max_rows)
    if tm >= rows and rows > sub:
        # Force >= 2 grid steps so ("parallel",) can use both TCs on v7x.
        half = (rows + 1) // 2
        tm = ((half + sub - 1) // sub) * sub

    grid = (pl.cdiv(rows, tm),)
    out2d = pl.pallas_call(
        _copy_tile_kernel,
        out_shape=jax.ShapeDtypeStruct((rows, lanes), x2d.dtype),
        grid=grid,
        # Block covers the full lane dim (lane-dense whenever possible).
        in_specs=[pl.BlockSpec((tm, lanes), lambda i: (i, 0))],
        out_specs=pl.BlockSpec((tm, lanes), lambda i: (i, 0)),
        # NOTE: no input_output_aliases -- without jit donation the alias only
        # triggers a defensive copy; a fresh output is the honest choice.
        compiler_params=pltpu.CompilerParams(
            dimension_semantics=("parallel",),
            vmem_limit_bytes=int(vmem_limit),
        ),
    )(x2d)
    return out2d.reshape(orig_shape) if reshaped else out2d


# ---------------------------------------------------------------------------
# Forward (pass-through semantics of the base class).
# ---------------------------------------------------------------------------
def message_passing_forward(x, edge_index, edge_type, rel_embed, *,
                            materialize=False, method="dma"):
    """JAX/Pallas implementation of MessagePassing.forward.

    edge_index / edge_type are accepted for signature parity; the base-class
    forward does not use them.
    """
    del edge_index, edge_type  # unused by the base-class forward
    if not materialize:
        # Fast path (recommended): the forward is a pure pass-through, so the
        # best kernel is no kernel -- zero HBM traffic, zero launch overhead.
        return x, rel_embed
    # Materializing path: only `x` goes through Pallas; the tiny rel_embed
    # table passes through in plain JAX (no DMA / VMEM cost).
    if method == "dma":
        return _hbm_dma_copy(x), rel_embed
    return _vmem_tiled_copy(x), rel_embed


class MessagePassingPallas:
    """Minimal JAX/Pallas counterpart of the PyTorch MessagePassing base class."""

    def __init__(self, in_channels, out_channels, in_channels_r, out_channels_r,
                 act=None, dropout=0.0, dtype=None, **kwargs):
        self.in_channels = in_channels
        self.out_channels = out_channels
        self.in_channels_r = in_channels_r
        self.out_channels_r = out_channels_r
        self.act = act
        self.dropout = dropout
        # TPU / Mosaic does not support f64; 'double' is coerced to float32.
        self.dtype = jnp.float32
        # The base class has no learnable parameters -- nothing to initialize.

    def __call__(self, x, edge_index, edge_type, rel_embed, *,
                 materialize=False, method="dma"):
        return message_passing_forward(x, edge_index, edge_type, rel_embed,
                                       materialize=materialize, method=method)


if __name__ == "__main__":
    key = jax.random.PRNGKey(0)
    k_x, k_rel, k_ei, k_et = jax.random.split(key, 4)

    num_ent = 256        # number of entities / nodes (small demo size)
    num_rel = 8          # number of relations
    num_edges = 64       # number of edges
    in_channels = 128    # node embedding dim
    in_channels_r = 128  # relation embedding dim

    x = jax.random.normal(k_x, (num_ent, in_channels), dtype=jnp.float32)
    rel_embed = jax.random.normal(k_rel, (num_rel, in_channels_r), dtype=jnp.float32)
    edge_index = jax.random.randint(k_ei, (2, num_edges), 0, num_ent, dtype=jnp.int32)
    edge_type = jax.random.randint(k_et, (num_edges,), 0, num_rel, dtype=jnp.int32)

    mp = MessagePassingPallas(in_channels, in_channels, in_channels_r, in_channels_r)

    # Fast path (no kernel): exact pass-through.
    fx, fr = mp(x, edge_index, edge_type, rel_embed)
    # Materializing Pallas paths.
    dx, dr = mp(x, edge_index, edge_type, rel_embed, materialize=True, method="dma")
    vx, vr = mp(x, edge_index, edge_type, rel_embed, materialize=True, method="vmem")
    jax.block_until_ready((fx, fr, dx, dr, vx, vr))

    for ox, orel in ((fx, fr), (dx, dr), (vx, vr)):
        assert ox.shape == x.shape and ox.dtype == x.dtype
        assert orel.shape == rel_embed.shape and orel.dtype == rel_embed.dtype
        assert bool(jnp.all(ox == x)) and bool(jnp.all(orel == rel_embed))
    print("KERNEL_OK")
</pallas_src>

<mosaic_0001>
module attributes {stable_mosaic.version = 11 : i64} {
  func.func @kernel(%arg0: memref<256x128xf32, #tpu.memory_space<any>>, %arg1: memref<256x128xf32, #tpu.memory_space<any>>, %arg2: memref<4x!tpu.dma_semaphore, #tpu.memory_space<semaphore_mem>>) attributes {dimension_semantics = [], scalar_prefetch = 0 : i64, scratch_operands = 1 : i64, tpu.core_type = #tpu.core_type<tc>} {
    %c0_i32 = arith.constant 0 : i32
    %c0_i32_0 = arith.constant 0 : i32
    %c0_i32_1 = arith.constant 0 : i32
    %0 = tpu.memref_slice %arg0[%c0_i32_0, %c0_i32_1] : memref<256x128xf32, #tpu.memory_space<any>> -> memref<64x128xf32, #tpu.memory_space<any>>
    %c0_i32_2 = arith.constant 0 : i32
    %c0_i32_3 = arith.constant 0 : i32
    %1 = tpu.memref_slice %arg1[%c0_i32_2, %c0_i32_3] : memref<256x128xf32, #tpu.memory_space<any>> -> memref<64x128xf32, #tpu.memory_space<any>>
    %2 = tpu.memref_slice %arg2[%c0_i32] : memref<4x!tpu.dma_semaphore, #tpu.memory_space<semaphore_mem>> -> memref<1x!tpu.dma_semaphore, #tpu.memory_space<semaphore_mem>>
    %3 = tpu.memref_squeeze %2 : memref<1x!tpu.dma_semaphore, #tpu.memory_space<semaphore_mem>> -> memref<!tpu.dma_semaphore, #tpu.memory_space<semaphore_mem>>
    tpu.enqueue_dma source(%0 : memref<64x128xf32, #tpu.memory_space<any>>) target(%1 : memref<64x128xf32, #tpu.memory_space<any>>) target_semaphore(%3 : memref<!tpu.dma_semaphore, #tpu.memory_space<semaphore_mem>>)
    %c1_i32 = arith.constant 1 : i32
    %c64_i32 = arith.constant 64 : i32
    %c0_i32_4 = arith.constant 0 : i32
    %4 = tpu.memref_slice %arg0[%c64_i32, %c0_i32_4] : memref<256x128xf32, #tpu.memory_space<any>> -> memref<64x128xf32, #tpu.memory_space<any>>
    %c64_i32_5 = arith.constant 64 : i32
    %c0_i32_6 = arith.constant 0 : i32
    %5 = tpu.memref_slice %arg1[%c64_i32_5, %c0_i32_6] : memref<256x128xf32, #tpu.memory_space<any>> -> memref<64x128xf32, #tpu.memory_space<any>>
    %6 = tpu.memref_slice %arg2[%c1_i32] : memref<4x!tpu.dma_semaphore, #tpu.memory_space<semaphore_mem>> -> memref<1x!tpu.dma_semaphore, #tpu.memory_space<semaphore_mem>>
    %7 = tpu.memref_squeeze %6 : memref<1x!tpu.dma_semaphore, #tpu.memory_space<semaphore_mem>> -> memref<!tpu.dma_semaphore, #tpu.memory_space<semaphore_mem>>
    tpu.enqueue_dma source(%4 : memref<64x128xf32, #tpu.memory_space<any>>) target(%5 : memref<64x128xf32, #tpu.memory_space<any>>) target_semaphore(%7 : memref<!tpu.dma_semaphore, #tpu.memory_space<semaphore_mem>>)
    %c2_i32 = arith.constant 2 : i32
    %c128_i32 = arith.constant 128 : i32
    %c0_i32_7 = arith.constant 0 : i32
    %8 = tpu.memref_slice %arg0[%c128_i32, %c0_i32_7] : memref<256x128xf32, #tpu.memory_space<any>> -> memref<64x128xf32, #tpu.memory_space<any>>
    %c128_i32_8 = arith.constant 128 : i32
    %c0_i32_9 = arith.constant 0 : i32
    %9 = tpu.memref_slice %arg1[%c128_i32_8, %c0_i32_9] : memref<256x128xf32, #tpu.memory_space<any>> -> memref<64x128xf32, #tpu.memory_space<any>>
    %10 = tpu.memref_slice %arg2[%c2_i32] : memref<4x!tpu.dma_semaphore, #tpu.memory_space<semaphore_mem>> -> memref<1x!tpu.dma_semaphore, #tpu.memory_space<semaphore_mem>>
    %11 = tpu.memref_squeeze %10 : memref<1x!tpu.dma_semaphore, #tpu.memory_space<semaphore_mem>> -> memref<!tpu.dma_semaphore, #tpu.memory_space<semaphore_mem>>
    tpu.enqueue_dma source(%8 : memref<64x128xf32, #tpu.memory_space<any>>) target(%9 : memref<64x128xf32, #tpu.memory_space<any>>) target_semaphore(%11 : memref<!tpu.dma_semaphore, #tpu.memory_space<semaphore_mem>>)
    %c3_i32 = arith.constant 3 : i32
    %c192_i32 = arith.constant 192 : i32
    %c0_i32_10 = arith.constant 0 : i32
    %12 = tpu.memref_slice %arg0[%c192_i32, %c0_i32_10] : memref<256x128xf32, #tpu.memory_space<any>> -> memref<64x128xf32, #tpu.memory_space<any>>
    %c192_i32_11 = arith.constant 192 : i32
    %c0_i32_12 = arith.constant 0 : i32
    %13 = tpu.memref_slice %arg1[%c192_i32_11, %c0_i32_12] : memref<256x128xf32, #tpu.memory_space<any>> -> memref<64x128xf32, #tpu.memory_space<any>>
    %14 = tpu.memref_slice %arg2[%c3_i32] : memref<4x!tpu.dma_semaphore, #tpu.memory_space<semaphore_mem>> -> memref<1x!tpu.dma_semaphore, #tpu.memory_space<semaphore_mem>>
    %15 = tpu.memref_squeeze %14 : memref<1x!tpu.dma_semaphore, #tpu.memory_space<semaphore_mem>> -> memref<!tpu.dma_semaphore, #tpu.memory_space<semaphore_mem>>
    tpu.enqueue_dma source(%12 : memref<64x128xf32, #tpu.memory_space<any>>) target(%13 : memref<64x128xf32, #tpu.memory_space<any>>) target_semaphore(%15 : memref<!tpu.dma_semaphore, #tpu.memory_space<semaphore_mem>>)
    %c0_i32_13 = arith.constant 0 : i32
    %c0_i32_14 = arith.constant 0 : i32
    %c0_i32_15 = arith.constant 0 : i32
    %16 = tpu.memref_slice %arg0[%c0_i32_14, %c0_i32_15] : memref<256x128xf32, #tpu.memory_space<any>> -> memref<64x128xf32, #tpu.memory_space<any>>
    %c0_i32_16 = arith.constant 0 : i32
    %c0_i32_17 = arith.constant 0 : i32
    %17 = tpu.memref_slice %arg1[%c0_i32_16, %c0_i32_17] : memref<256x128xf32, #tpu.memory_space<any>> -> memref<64x128xf32, #tpu.memory_space<any>>
    %18 = tpu.memref_slice %arg2[%c0_i32_13] : memref<4x!tpu.dma_semaphore, #tpu.memory_space<semaphore_mem>> -> memref<1x!tpu.dma_semaphore, #tpu.memory_space<semaphore_mem>>
    %19 = tpu.memref_squeeze %18 : memref<1x!tpu.dma_semaphore, #tpu.memory_space<semaphore_mem>> -> memref<!tpu.dma_semaphore, #tpu.memory_space<semaphore_mem>>
    tpu.wait_dma2 semaphore(%19 : memref<!tpu.dma_semaphore, #tpu.memory_space<semaphore_mem>>) src(%16 : memref<64x128xf32, #tpu.memory_space<any>>) dst(%17 : memref<64x128xf32, #tpu.memory_space<any>>)
    %c1_i32_18 = arith.constant 1 : i32
    %c64_i32_19 = arith.constant 64 : i32
    %c0_i32_20 = arith.constant 0 : i32
    %20 = tpu.memref_slice %arg0[%c64_i32_19, %c0_i32_20] : memref<256x128xf32, #tpu.memory_space<any>> -> memref<64x128xf32, #tpu.memory_space<any>>
    %c64_i32_21 = arith.constant 64 : i32
    %c0_i32_22 = arith.constant 0 : i32
    %21 = tpu.memref_slice %arg1[%c64_i32_21, %c0_i32_22] : memref<256x128xf32, #tpu.memory_space<any>> -> memref<64x128xf32, #tpu.memory_space<any>>
    %22 = tpu.memref_slice %arg2[%c1_i32_18] : memref<4x!tpu.dma_semaphore, #tpu.memory_space<semaphore_mem>> -> memref<1x!tpu.dma_semaphore, #tpu.memory_space<semaphore_mem>>
    %23 = tpu.memref_squeeze %22 : memref<1x!tpu.dma_semaphore, #tpu.memory_space<semaphore_mem>> -> memref<!tpu.dma_semaphore, #tpu.memory_space<semaphore_mem>>
    tpu.wait_dma2 semaphore(%23 : memref<!tpu.dma_semaphore, #tpu.memory_space<semaphore_mem>>) src(%20 : memref<64x128xf32, #tpu.memory_space<any>>) dst(%21 : memref<64x128xf32, #tpu.memory_space<any>>)
    %c2_i32_23 = arith.constant 2 : i32
    %c128_i32_24 = arith.constant 128 : i32
    %c0_i32_25 = arith.constant 0 : i32
    %24 = tpu.memref_slice %arg0[%c128_i32_24, %c0_i32_25] : memref<256x128xf32, #tpu.memory_space<any>> -> memref<64x128xf32, #tpu.memory_space<any>>
    %c128_i32_26 = arith.constant 128 : i32
    %c0_i32_27 = arith.constant 0 : i32
    %25 = tpu.memref_slice %arg1[%c128_i32_26, %c0_i32_27] : memref<256x128xf32, #tpu.memory_space<any>> -> memref<64x128xf32, #tpu.memory_space<any>>
    %26 = tpu.memref_slice %arg2[%c2_i32_23] : memref<4x!tpu.dma_semaphore, #tpu.memory_space<semaphore_mem>> -> memref<1x!tpu.dma_semaphore, #tpu.memory_space<semaphore_mem>>
    %27 = tpu.memref_squeeze %26 : memref<1x!tpu.dma_semaphore, #tpu.memory_space<semaphore_mem>> -> memref<!tpu.dma_semaphore, #tpu.memory_space<semaphore_mem>>
    tpu.wait_dma2 semaphore(%27 : memref<!tpu.dma_semaphore, #tpu.memory_space<semaphore_mem>>) src(%24 : memref<64x128xf32, #tpu.memory_space<any>>) dst(%25 : memref<64x128xf32, #tpu.memory_space<any>>)
    %c3_i32_28 = arith.constant 3 : i32
    %c192_i32_29 = arith.constant 192 : i32
    %c0_i32_30 = arith.constant 0 : i32
    %28 = tpu.memref_slice %arg0[%c192_i32_29, %c0_i32_30] : memref<256x128xf32, #tpu.memory_space<any>> -> memref<64x128xf32, #tpu.memory_space<any>>
    %c192_i32_31 = arith.constant 192 : i32
    %c0_i32_32 = arith.constant 0 : i32
    %29 = tpu.memref_slice %arg1[%c192_i32_31, %c0_i32_32] : memref<256x128xf32, #tpu.memory_space<any>> -> memref<64x128xf32, #tpu.memory_space<any>>
    %30 = tpu.memref_slice %arg2[%c3_i32_28] : memref<4x!tpu.dma_semaphore, #tpu.memory_space<semaphore_mem>> -> memref<1x!tpu.dma_semaphore, #tpu.memory_space<semaphore_mem>>
    %31 = tpu.memref_squeeze %30 : memref<1x!tpu.dma_semaphore, #tpu.memory_space<semaphore_mem>> -> memref<!tpu.dma_semaphore, #tpu.memory_space<semaphore_mem>>
    tpu.wait_dma2 semaphore(%31 : memref<!tpu.dma_semaphore, #tpu.memory_space<semaphore_mem>>) src(%28 : memref<64x128xf32, #tpu.memory_space<any>>) dst(%29 : memref<64x128xf32, #tpu.memory_space<any>>)
    return
  }
}

</mosaic_0001>

<bundles_post_ra>
// kernel: tpu_custom_call.1
= control target key start
LH: loop header
LB: loop body
LE: loop exit
PB: predicated region body
PF: predicated region fallthrough
CT: control target
= control target key end

     0   :  { %s116_s15 = smov [#allocation2]   ;;  %s117_s16 = smov [#allocation3]   ;;  %s163_s0 = inlined_call_operand.hbm [shape: f32[256,128], index: 0, kind: input, shape index: {}]   ;;  %s164_s1 = inlined_call_operand.hbm [shape: f32[256,128], index: 1, kind: output, shape index: {}]  }
   0x1   :  { %s10_s8 = sshll.u32 %s163_s0, 4  ;;  %s12_s11 = sshll.u32 %s164_s1, 4  ;;  %s11_s8 = int_to_ptr.hbm [resolvable:$true] %s10_s8  ;;  %s13_s11 = int_to_ptr.hbm [resolvable:$true] %s12_s11 }
   0x2   :  { %s17_s14 = scalar_lea.hbm %s163_s0, 64  ;;  %s118_s17 = smov 0  }
   0x3   :  { %16 = dma.general %s11_s8, 1024, %s13_s11, %s116_s15, %s117_s16, [#allocation4], %s118_s17, 0  }
   0x4   :  { %s18_s20 = scalar_lea.hbm %s164_s1, 64  ;;  %s24_s21 = sshll.u32 %s17_s14, 4  ;;  %s25_s21 = int_to_ptr.hbm [resolvable:$true] %s24_s21 }
   0x5   :  { %s26_s22 = sshll.u32 %s18_s20, 4  ;;  %s31_s25 = scalar_lea.hbm %s163_s0, 128  ;;  %s27_s22 = int_to_ptr.hbm [resolvable:$true] %s26_s22 }
   0x6   :  { %s119_s26 = smov [#allocation2 + $0x1]   ;;  %s120_s27 = smov [#allocation5]  }
   0x7   :  { %30 = dma.general %s25_s21, 1024, %s27_s22, %s119_s26, %s120_s27, [#allocation6], %s118_s17, 0  }
   0x8   :  { %s32_s30 = scalar_lea.hbm %s164_s1, 128  ;;  %s38_s2 = sshll.u32 %s31_s25, 4  ;;  %s39_s2 = int_to_ptr.hbm [resolvable:$true] %s38_s2 }
   0x9   :  { %s40_s3 = sshll.u32 %s32_s30, 4  ;;  %s45_s6 = scalar_lea.hbm %s163_s0, 192  ;;  %s41_s3 = int_to_ptr.hbm [resolvable:$true] %s40_s3 }
   0xa   :  { %s121_s7 = smov [#allocation2 + $0x2]   ;;  %s122_s8 = smov [#allocation7]  }
   0xb   :  { %44 = dma.general %s39_s2, 1024, %s41_s3, %s121_s7, %s122_s8, [#allocation8], %s118_s17, 0  }
   0xc   :  { %s46_s11 = scalar_lea.hbm %s164_s1, 192  ;;  %s52_s12 = sshll.u32 %s45_s6, 4  ;;  %s53_s12 = int_to_ptr.hbm [resolvable:$true] %s52_s12 }
   0xd   :  { %s54_s13 = sshll.u32 %s46_s11, 4  ;;  %s123_s14 = smov [#allocation2 + $0x3]   ;;  %s55_s13 = int_to_ptr.hbm [resolvable:$true] %s54_s13 }
   0xe   :  { %s124_s15 = smov [#allocation9]  }
   0xf   :  { %58 = dma.general %s53_s12, 1024, %s55_s13, %s123_s14, %s124_s15, [#allocation10], %s118_s17, 0  }
  0x10   :  { %108 = dma.done.wait [#allocation2], 1024 }
  0x11   :  { %109 = vsyncadd [#allocation2], 4294966272 }
  0x12   :  { %110 = dma.done.wait [#allocation2 + $0x1], 1024 }
  0x13   :  { %111 = vsyncadd [#allocation2 + $0x1], 4294966272 }
  0x14   :  { %112 = dma.done.wait [#allocation2 + $0x2], 1024 }
  0x15   :  { %113 = vsyncadd [#allocation2 + $0x2], 4294966272 }
  0x16   :  { %114 = dma.done.wait [#allocation2 + $0x3], 1024 }
  0x17   :  { %115 = vsyncadd [#allocation2 + $0x3], 4294966272 }
  0x18   :  { %68 = vsyncmov [#allocation2] }
  0x1b   :  { %s69_s0 = vpop.sfrf %68 }
  0x1c   :  { %p95_p0 = scmp.ne.s32.totalorder %s69_s0, 0 }
  0x1e   :  { %73 = shalt.err (%p95_p0)  }
  0x1f   :  { %75 = vsyncmov [#allocation2 + $0x1] }
  0x22   :  { %s76_s1 = vpop.sfrf %75 }
  0x23   :  { %p96_p1 = scmp.ne.s32.totalorder %s76_s1, 0 }
  0x25   :  { %80 = shalt.err (%p96_p1)  }
  0x26   :  { %82 = vsyncmov [#allocation2 + $0x2] }
  0x29   :  { %s83_s16 = vpop.sfrf %82 }
  0x2a   :  { %p97_p2 = scmp.ne.s32.totalorder %s83_s16, 0 }
  0x2c   :  { %87 = shalt.err (%p97_p2)  }
  0x2d   :  { %89 = vsyncmov [#allocation2 + $0x3] }
  0x30   :  { %s90_s17 = vpop.sfrf %89 }
  0x31   :  { %p98_p3 = scmp.ne.s32.totalorder %s90_s17, 0 }
  0x33   :  { %94 = shalt.err (%p98_p3)  }

</bundles_post_ra>
